<compile_context>
chip_gen: v7x
topology: tpu7x:2x2x1
jax: 0.10.0
libtpu: 0.0.40
codegen_flags: <defaults>
</compile_context>

<pallas_src>
import jax
import jax.numpy as jnp
from jax.experimental import pallas as pl
from jax.experimental.pallas import tpu as pltpu


def _round_up(x, m):
    return ((x + m - 1) // m) * m


# ------------------------------ Pallas kernel -------------------------------

def _reparam_kernel(ry_ref, rxt_ref, x_ref, o_ref, t_ref):
    # ry_ref : (Hp, Hp)  row-resampling matrix (zero-padded, grid-resident)
    # rxt_ref: (Wp, Wp)  Rx^T                (zero-padded, grid-resident)
    # x_ref / o_ref / t_ref: (tn*Hp, Wp) flattened block of tn lenslet images.
    hp = ry_ref.shape[0]
    tn = x_ref.shape[0] // hp
    ry = ry_ref[...]                       # hoisted: loaded once per grid step

    # Row pass: t_i = Ry @ x_i per image. Each matmul is (Hp,Hp)@(Hp,Wp) with
    # Wp a multiple of 128 (lane dense). fori_loop(unroll=True) keeps live
    # ranges bounded while staying visible to the scheduler.
    def row_pass(i, carry):
        r0 = pl.multiple_of(i * hp, 8)     # Hp % 8 == 0 -> sublane-aligned
        t_ref[pl.ds(r0, hp), :] = jnp.dot(
            ry, x_ref[pl.ds(r0, hp), :], preferred_element_type=jnp.float32)
        return carry

    jax.lax.fori_loop(0, tn, row_pass, 0, unroll=True)

    # Column pass: one batched (tn*Hp, Wp) @ (Wp, Wp) MXU matmul; result is
    # stored full-width (unmasked vst) straight into the output block.
    o_ref[...] = jnp.dot(t_ref[...], rxt_ref[...],
                         preferred_element_type=jnp.float32).astype(o_ref.dtype)


# ------------------------------ sizing helpers -------------------------------

def _vmem_capacity_bytes():
    # Generation-aware physical VMEM (128 MiB v5e/v6e, 64 MiB per-core v7x).
    # Fallback is the smallest (v7x), so the derived budget is safe everywhere.
    try:
        cap = getattr(pltpu.get_tpu_info(), "vmem_capacity_bytes", None)
        if cap:
            return int(cap)
    except Exception:
        pass
    return 64 << 20


def _choose_tile(n, hp, wp, block_budget_bytes, max_unroll=32):
    """Images per grid step. Budget covers 2x in + 2x out (double buffered)
    + 1x f32 scratch = 5 live f32 copies of every image in the block."""
    per_img = 5 * hp * wp * 4
    tn = max(1, block_budget_bytes // per_img)
    tn = int(min(tn, max_unroll, max(n, 1)))
    # v7x megacore: keep >= 4 grid steps (2 TCs x >= 2 steps) when possible.
    if n >= 4:
        tn = max(1, min(tn, n // 4))
    # Prefer (in order): a tile that divides n (no ragged garbage compute),
    # an even number of blocks, then the largest tile — without giving up more
    # than half the budgeted tile size.
    lo = max(tn // 2, 1)
    best, best_key = tn, (-1, -1, -1)
    for t in range(lo, tn + 1):
        blocks = -(-n // t)
        key = (1 if n % t == 0 else 0, 1 if blocks % 2 == 0 else 0, t)
        if key > best_key:
            best_key, best = key, t
    return best


# ------------------------------ pallas wrapper -------------------------------

def lf_reparam_pallas(x_img, ry, rxt):
    # x_img: (N, Hp, Wp) f32 zero-padded lenslet images (Hp % 8 == 0,
    # Wp % 128 == 0); ry: (Hp, Hp); rxt: (Wp, Wp).  Returns (N, Hp, Wp) with
    # out_i = ry @ x_i @ rxt.
    n, hp, wp = x_img.shape
    assert hp % 8 == 0 and wp % 128 == 0
    assert ry.shape == (hp, hp) and rxt.shape == (wp, wp)

    cap = _vmem_capacity_bytes()
    fixed = 2 * 4 * (hp * hp + wp * wp)          # double-buffered resident Ry, Rx^T
    block_budget = max(int(0.55 * cap) - fixed, 5 * hp * wp * 4)
    tn = _choose_tile(n, hp, wp, block_budget)
    rows = tn * hp
    n_blocks = pl.cdiv(n, tn)

    x2 = x_img.reshape(n * hp, wp)               # leading-dim reshape, free

    cost = pl.CostEstimate(
        flops=2 * n * hp * wp * (hp + wp),
        transcendentals=0,
        bytes_accessed=4 * (2 * n * hp * wp + hp * hp + wp * wp),
    )

    out = pl.pallas_call(
        _reparam_kernel,
        out_shape=jax.ShapeDtypeStruct((n * hp, wp), jnp.float32),
        grid_spec=pltpu.PrefetchScalarGridSpec(
            num_scalar_prefetch=0,
            grid=(n_blocks,),
            in_specs=[
                pl.BlockSpec((hp, hp), lambda i: (0, 0)),     # Ry   (grid-resident)
                pl.BlockSpec((wp, wp), lambda i: (0, 0)),     # Rx^T (grid-resident)
                pl.BlockSpec((rows, wp), lambda i: (i, 0)),   # image block
            ],
            out_specs=pl.BlockSpec((rows, wp), lambda i: (i, 0)),
            scratch_shapes=[pltpu.VMEM((rows, wp), jnp.float32)],
        ),
        compiler_params=pltpu.CompilerParams(
            dimension_semantics=("parallel",),
            vmem_limit_bytes=int(0.9 * cap),
        ),
        cost_estimate=cost,
    )(ry, rxt, x2)
    return out.reshape(n, hp, wp)


# --------------------------- Module (forward only) ---------------------------

class LFReparam:
    """Forward-only JAX/Pallas port of Model/LFlayer.py::LFReparam."""

    def __init__(self, x_res, y_res, uv_diameter):
        self.x_res = x_res
        self.y_res = y_res
        self.uv_diameter = uv_diameter
        self.uv_radius = uv_diameter // 2
        self._jit_forward = jax.jit(self._forward)

    def _resample_matrix(self, res, size, size_padded, alpha):
        # (size_padded, size_padded) 1-D resampling matrix for one axis; rows
        # and columns beyond `size` stay zero (exact zero-padding).
        uv, rad = self.uv_diameter, self.uv_radius
        idx = jnp.arange(size, dtype=jnp.int32)
        ang = idx % uv                                   # v (rows) / u (cols)
        spa = idx // uv                                  # y (rows) / x (cols)
        pos = spa.astype(jnp.float32) - alpha * (ang - rad).astype(jnp.float32)
        fl = jnp.floor(pos)
        i1 = jnp.clip(fl, 0, res - 1).astype(jnp.int32)
        i2 = jnp.clip(fl + 1.0, 0, res - 1).astype(jnp.int32)
        w2 = pos - fl
        w1 = 1.0 - w2
        src1 = ang + i1 * uv
        src2 = ang + i2 * uv
        r = jnp.zeros((size_padded, size_padded), jnp.float32)
        # coincident (clamped) indices must accumulate, matching torch's `+=`.
        r = r.at[idx, src1].add(w1)
        r = r.at[idx, src2].add(w2)
        return r

    def _forward(self, x, alpha):
        x = x.astype(jnp.float32)
        b, c, h, w = x.shape
        assert h == self.y_res * self.uv_diameter
        assert w == self.x_res * self.uv_diameter
        alpha = jnp.asarray(alpha, jnp.float32)
        hp = _round_up(h, 8)                 # sublane-aligned rows
        wp = _round_up(w, 128)               # lane-dense columns
        ry = self._resample_matrix(self.y_res, h, hp, alpha)   # (Hp, Hp)
        rx = self._resample_matrix(self.x_res, w, wp, alpha)   # (Wp, Wp)
        xp = x.reshape(b * c, h, w)
        if hp != h or wp != w:
            xp = jnp.pad(xp, ((0, 0), (0, hp - h), (0, wp - w)))
        out = lf_reparam_pallas(xp, ry, rx.T)
        return out[:, :h, :w].reshape(b, c, h, w)

    def __call__(self, x, alpha):
        return self._jit_forward(x, alpha)


# -------------------------------- reference ----------------------------------

def _reference(x, alpha, y_res, x_res, uv):
    # Direct bilinear-gather formulation, mirroring the PyTorch code.
    rad = uv // 2
    H, W = x.shape[-2], x.shape[-1]
    row = jnp.arange(H)
    col = jnp.arange(W)
    v = (row % uv).astype(jnp.float32); yy = (row // uv).astype(jnp.float32)
    u = (col % uv).astype(jnp.float32); xx = (col // uv).astype(jnp.float32)
    y_ind = yy - alpha * (v - rad)
    x_ind = xx - alpha * (u - rad)
    yfl = jnp.floor(y_ind); xfl = jnp.floor(x_ind)
    y1 = jnp.clip(yfl, 0, y_res - 1).astype(jnp.int32)
    y2 = jnp.clip(yfl + 1, 0, y_res - 1).astype(jnp.int32)
    x1 = jnp.clip(xfl, 0, x_res - 1).astype(jnp.int32)
    x2 = jnp.clip(xfl + 1, 0, x_res - 1).astype(jnp.int32)
    y2w = y_ind - yfl; y1w = 1.0 - y2w
    x2w = x_ind - xfl; x1w = 1.0 - x2w
    r1 = (row % uv) + y1 * uv; r2 = (row % uv) + y2 * uv
    c1 = (col % uv) + x1 * uv; c2 = (col % uv) + x2 * uv
    g = lambda r, c: x[:, :, r[:, None], c[None, :]]
    out = (y1w[:, None] * x1w[None, :]) * g(r1, c1)
    out = out + (y1w[:, None] * x2w[None, :]) * g(r1, c2)
    out = out + (y2w[:, None] * x1w[None, :]) * g(r2, c1)
    out = out + (y2w[:, None] * x2w[None, :]) * g(r2, c2)
    return out


if __name__ == "__main__":
    key = jax.random.PRNGKey(0)
    B, C, uv, y_res, x_res = 2, 4, 3, 8, 8
    H, W = y_res * uv, x_res * uv                     # 24 x 24 lenslet image
    x = jax.random.normal(key, (B, C, H, W), dtype=jnp.float32)

    mod = LFReparam(x_res=x_res, y_res=y_res, uv_diameter=uv)
    for alpha in (0.75, -0.6, 1.3):
        y = jax.block_until_ready(mod(x, alpha))
        ref = _reference(x, alpha, y_res, x_res, uv)
        assert y.shape == ref.shape, (alpha, y.shape, ref.shape)
        max_err = float(jnp.max(jnp.abs(y - ref)))
        assert bool(jnp.allclose(y, ref, atol=2e-3, rtol=2e-3)), (alpha, max_err)

    print("KERNEL_OK")
</pallas_src>

<mosaic_0001>
module attributes {stable_mosaic.version = 11 : i64} {
  func.func @_reparam_kernel(%arg0: i32, %arg1: memref<24x24xf32, #tpu.memory_space<vmem>>, %arg2: memref<128x128xf32, #tpu.memory_space<vmem>>, %arg3: memref<48x128xf32, #tpu.memory_space<vmem>>, %arg4: memref<48x128xf32, #tpu.memory_space<vmem>>, %arg5: memref<48x128xf32, #tpu.memory_space<vmem>>) attributes {dimension_semantics = [#tpu.dimension_semantics<parallel>], iteration_bounds = array<i64: 4>, scalar_prefetch = 0 : i64, scratch_operands = 1 : i64, tpu.core_type = #tpu.core_type<tc>, window_params = [{pipeline_mode = #tpu.pipeline_mode<synchronous>, transform_indices = @transform_0, window_bounds = array<i64: 24, 24>}, {pipeline_mode = #tpu.pipeline_mode<synchronous>, transform_indices = @transform_1, window_bounds = array<i64: 128, 128>}, {transform_indices = @transform_2, window_bounds = array<i64: 48, 128>}, {transform_indices = @transform_3, window_bounds = array<i64: 48, 128>}]} {
    %c0 = arith.constant 0 : index
    %c0_0 = arith.constant 0 : index
    %0 = vector.load %arg1[%c0, %c0_0] : memref<24x24xf32, #tpu.memory_space<vmem>>, vector<24x24xf32>
    %c0_i32 = arith.constant 0 : i32
    %c24_i32 = arith.constant 24 : i32
    %1 = arith.muli %c0_i32, %c24_i32 : i32
    %2 = tpu.assume_multiple %1, 8 : i32
    %3 = arith.index_cast %2 : i32 to index
    %c0_1 = arith.constant 0 : index
    %4 = vector.load %arg3[%3, %c0_1] : memref<48x128xf32, #tpu.memory_space<vmem>>, vector<24x128xf32>
    %cst = arith.constant dense<0.000000e+00> : vector<24x128xf32>
    %5 = tpu.matmul %0, %4, %cst {dimension_numbers = #tpu.dot_dimension_numbers<[1], [0], [0], [1], [0, 0, 1, 1], [], []>} : vector<24x24xf32>, vector<24x128xf32>, vector<24x128xf32> -> vector<24x128xf32>
    %6 = arith.index_cast %2 : i32 to index
    %c0_2 = arith.constant 0 : index
    %7 = vector.load %arg5[%6, %c0_2] : memref<48x128xf32, #tpu.memory_space<vmem>>, vector<24x128xf32>
    tpu.vector_store %arg5[%6, %c0_2], %5 {strides = array<i32>} : memref<48x128xf32, #tpu.memory_space<vmem>>, vector<24x128xf32>,
    %c1_i32 = arith.constant 1 : i32
    %c24_i32_3 = arith.constant 24 : i32
    %8 = arith.muli %c1_i32, %c24_i32_3 : i32
    %9 = tpu.assume_multiple %8, 8 : i32
    %10 = arith.index_cast %9 : i32 to index
    %c0_4 = arith.constant 0 : index
    %11 = vector.load %arg3[%10, %c0_4] : memref<48x128xf32, #tpu.memory_space<vmem>>, vector<24x128xf32>
    %cst_5 = arith.constant dense<0.000000e+00> : vector<24x128xf32>
    %12 = tpu.matmul %0, %11, %cst_5 {dimension_numbers = #tpu.dot_dimension_numbers<[1], [0], [0], [1], [0, 0, 1, 1], [], []>} : vector<24x24xf32>, vector<24x128xf32>, vector<24x128xf32> -> vector<24x128xf32>
    %13 = arith.index_cast %9 : i32 to index
    %c0_6 = arith.constant 0 : index
    %14 = vector.load %arg5[%13, %c0_6] : memref<48x128xf32, #tpu.memory_space<vmem>>, vector<24x128xf32>
    tpu.vector_store %arg5[%13, %c0_6], %12 {strides = array<i32>} : memref<48x128xf32, #tpu.memory_space<vmem>>, vector<24x128xf32>,
    %c2_i32 = arith.constant 2 : i32
    %c0_7 = arith.constant 0 : index
    %c0_8 = arith.constant 0 : index
    %15 = vector.load %arg5[%c0_7, %c0_8] : memref<48x128xf32, #tpu.memory_space<vmem>>, vector<48x128xf32>
    %c0_9 = arith.constant 0 : index
    %c0_10 = arith.constant 0 : index
    %16 = vector.load %arg2[%c0_9, %c0_10] : memref<128x128xf32, #tpu.memory_space<vmem>>, vector<128x128xf32>
    %cst_11 = arith.constant dense<0.000000e+00> : vector<48x128xf32>
    %17 = tpu.matmul %15, %16, %cst_11 {dimension_numbers = #tpu.dot_dimension_numbers<[1], [0], [0], [1], [0, 0, 1, 1], [], []>} : vector<48x128xf32>, vector<128x128xf32>, vector<48x128xf32> -> vector<48x128xf32>
    %c0_12 = arith.constant 0 : index
    %c0_13 = arith.constant 0 : index
    %18 = vector.load %arg4[%c0_12, %c0_13] : memref<48x128xf32, #tpu.memory_space<vmem>>, vector<48x128xf32>
    tpu.vector_store %arg4[%c0_12, %c0_13], %17 {strides = array<i32>} : memref<48x128xf32, #tpu.memory_space<vmem>>, vector<48x128xf32>,
    return
  }
  func.func @transform_0(%arg0: i32) -> (i32, i32) {
    %c0_i32 = arith.constant 0 : i32
    %c0_i32_0 = arith.constant 0 : i32
    %c0_i32_1 = arith.constant 0 : i32
    return %c0_i32, %c0_i32_0 : i32, i32
  }
  func.func @transform_1(%arg0: i32) -> (i32, i32) {
    %c0_i32 = arith.constant 0 : i32
    %c0_i32_0 = arith.constant 0 : i32
    %c0_i32_1 = arith.constant 0 : i32
    return %c0_i32, %c0_i32_0 : i32, i32
  }
  func.func @transform_2(%arg0: i32) -> (i32, i32) {
    %c0_i32 = arith.constant 0 : i32
    %c0_i32_0 = arith.constant 0 : i32
    return %arg0, %c0_i32 : i32, i32
  }
  func.func @transform_3(%arg0: i32) -> (i32, i32) {
    %c0_i32 = arith.constant 0 : i32
    %c0_i32_0 = arith.constant 0 : i32
    return %arg0, %c0_i32 : i32, i32
  }
}

</mosaic_0001>

<bundles_post_ra>
// kernel: _forward.1
= control target key start
LH: loop header
LB: loop body
LE: loop exit
PB: predicated region body
PF: predicated region fallthrough
CT: control target
= control target key end

     0   :  { %8 = vsyncpa [#allocation4], 0  ;;  %s1041_s0 = inlined_call_operand.vmem [shape: f32[24,24], index: 0, kind: input, shape index: {}]   ;;  %s1042_s1 = inlined_call_operand.vmem [shape: f32[128,128], index: 1, kind: input, shape index: {}]   ;;  %s1043_s2 = inlined_call_operand.vmem [shape: f32[192,128], index: 2, kind: input, shape index: {}]   ;;  %s1044_s3 = inlined_call_operand.hbm [shape: f32[192,128], index: 3, kind: output, shape index: {}]  }
   0x1   :  { %10 = vsyncpa [#allocation4 + $0x1], 0  ;;  %s854_s12 = smov 0   ;;  %s856_s13 = smov 0  }
   0x2   :  { %s858_s14 = smov 0   ;;  %s860_s15 = smov 0  }
   0x3 LB: > { %s875_s16 = sadd.s32 4294967295, %s826_s15   ;;  %s558_s17 = sadd.s32 4294967294, %s826_s15   ;;  %s826_s15 = sphi %s860_s15, %s1050_s15   ;;  %s822_s14 = sphi %s858_s14, %s1049_s14   ;;  %s818_s13 = sphi %s856_s13, %s1048_s13   ;;  %s814_s12 = sphi %s854_s12, %s1047_s12  }
   0x4   : > { %s879_s18 = sadd.s32 1, %s826_s15   ;;  %s91_s19 = sadd.s32 1, %s822_s14 }
   0x5   : > { %s88_s20 = ssub.s32 %s826_s15, %s879_s18  ;;  %p101_p0 = scmp.ne.s32.totalorder %s822_s14, %s818_s13 }
   0x6   : > { %p89_p1 = scmp.eq.s32.totalorder %s88_s20, 0  ;;  %p102_p2 = scmp.eq.s32.totalorder %s875_s16, 3 }
   0x7   : > { %p107_p3 = scmp.ne.s32.totalorder %s818_s13, %s814_s12  ;;  %p108_p4 = scmp.eq.s32.totalorder %s558_s17, 3 }
   0x8   : > { %s890_s21 = scalar_select %p89_p1, %s822_s14, %s91_s19  }
   0x9   : > { %p892_p5 = por %p102_p2, %p101_p0  ;;  %p896_p6 = por %p108_p4, %p107_p3 }
   0xa   : > { %p561_p7 = scmp.ge.s32.totalorder %s826_s15, 1  ;;  %p141_p8 = scmp.lt.s32.totalorder %s826_s15, 5 }
   0xc   : > { %p142_p9 = pnand %p561_p7, %p141_p8 }
   0xd   : > { %s165_s24 = smul.u32 (!%p142_p9), 6, %s875_s16  ;;  %v828_v0 = vmov (!%p142_p9), 0.0|0.0   ;;  %vm829_vm0 = vmmov (!%p142_p9), 0   ;;  %v830_v1 = vmov (!%p142_p9), 0.0   ;;  %v365_v2 = vld [vmem:[%s1042_s1] sm:$0xff] (!%p142_p9)  ;;  %v366_v3 = vld [vmem:[%s1042_s1 + $0x8] sm:$0xff] (!%p142_p9) }
   0xe   : > { %145 = sbr.rel (%p142_p9) target bundleno = 492 (0x1ec), region = 32  ;;  %681 = vmatprep.subr.bf16.mxu1 (!%p142_p9), %v828_v0  ;;  %616 = vmatprep.mubr.msk.f32.mxu1 (!%p142_p9), %vm829_vm0, %v830_v1  ;;  %v367_v4 = vld [vmem:[%s1042_s1 + $0x10] sm:$0xff] (!%p142_p9)  ;;  %v368_v5 = vld [vmem:[%s1042_s1 + $0x18] sm:$0xff] (!%p142_p9)  ;;  %v687_v6 = vpack.c.bf16 (!%p142_p9), %v366_v3, %v365_v2  ;;  %v369_v8 = vld [vmem:[%s1042_s1 + $0x20] sm:$0xff] (!%p142_p9)  ;;  %vm178_vm1 = vcmask (!%p142_p9), 195584   ;;  %s162_s4 = sand.u32 (!%p142_p9), 1, %s818_s13  }
   0xf   : > { %p166_p10 = scmp.lt.s32.totalorder (!%p142_p9), %s165_s24, 23  ;;  %v691_v7 = vpack.c.bf16 (!%p142_p9), %v368_v5, %v367_v4  ;;  %v370_v9 = vld [vmem:[%s1042_s1 + $0x28] sm:$0xff] (!%p142_p9)  ;;  %v371_v11 = vld [vmem:[%s1042_s1 + $0x30] sm:$0xff] (!%p142_p9)  ;;  %v372_v14 = vld [vmem:[%s1042_s1 + $0x38] sm:$0xff] (!%p142_p9)  ;;  %s719_s5 = smul.u32 (!%p142_p9), 48, %s162_s4 }
  0x10   : > { %688 = vmatprep.subr.bf16.mxu0 (!%p142_p9), %v687_v6  ;;  %v695_v10 = vpack.c.bf16 (!%p142_p9), %v370_v9, %v369_v8  ;;  %v699_v18 = vpack.c.bf16 (!%p142_p9), %v372_v14, %v371_v11  ;;  %v373_v20 = vld [vmem:[%s1042_s1 + $0x40] sm:$0xff] (!%p142_p9)  ;;  %v374_v21 = vld [vmem:[%s1042_s1 + $0x48] sm:$0xff] (!%p142_p9)  ;;  %v375_v25 = vld [vmem:[%s1042_s1 + $0x50] sm:$0xff] (!%p142_p9)  ;;  %s575_s7 = smul.u32 (!%p142_p9), 768, %s875_s16  ;;  %s1000_s17 = scalar_lea.sflag (!%p142_p9), [#allocation4], %s162_s4 }
  0x11   : > { %690 = vmatpush3.bf16.msra.mxu0 (!%p142_p9), %v687_v6  ;;  %v172_v22 = vld [vmem:[%s1041_s0] sm:$0xff] (!%p142_p9)  ;;  %v703_v24 = vpack.c.bf16 (!%p142_p9), %v374_v21, %v373_v20  ;;  %v376_v26 = vld [vmem:[%s1042_s1 + $0x58] sm:$0xff] (!%p142_p9)  ;;  %v173_v27 = vld [vmem:[%s1041_s0 + $0x8] sm:$0xff] (!%p142_p9)  ;;  %s164_s6 = scalar_lea.vmem (!%p142_p9), [#allocation3], %s719_s5  ;;  %s831_s16 = smov (!%p142_p9), [#allocation3]  }
  0x12   : > { %692 = vmatprep.subr.bf16.mxu0 (!%p142_p9), %v691_v7  ;;  %v707_v29 = vpack.c.bf16 (!%p142_p9), %v376_v26, %v375_v25  ;;  %v377_v30 = vld [vmem:[%s1042_s1 + $0x60] sm:$0xff] (!%p142_p9)  ;;  %v378_v31 = vld [vmem:[%s1042_s1 + $0x68] sm:$0xff] (!%p142_p9)  ;;  %v174_v32 = vld [vmem:[%s1041_s0 + $0x10] sm:$0xff] (!%p142_p9)  ;;  %s496_s8 = sshll.u32 (!%p142_p9), %s164_s6, 4  ;;  %s998_s11 = scalar_lea.hbm (!%p142_p9), %s1044_s3, %s575_s7  ;;  %s993_s8 = int_to_ptr.vmem [resolvable:$true] %s496_s8 }
  0x13   : > { %v711_v33 = vpack.c.bf16 (!%p142_p9), %v378_v31, %v377_v30  ;;  %v379_v34 = vld [vmem:[%s1042_s1 + $0x70] sm:$0xff] (!%p142_p9)  ;;  %v380_v35 = vld [vmem:[%s1042_s1 + $0x78] sm:$0xff] (!%p142_p9)  ;;  %s764_s20 = scalar_lea.vmem (!%p142_p9), %s993_s8, 768  ;;  %s768_s25 = sshll.u32 (!%p142_p9), %s831_s16, 4  ;;  %s769_s25 = int_to_ptr.vmem [resolvable:$false] %s768_s25 }
  0x14   : > { %v715_v36 = vpack.c.bf16 (!%p142_p9), %v380_v35, %v379_v34  ;;  %p765_p11 = scmp.ne.s32.totalorder (!%p142_p9), %s993_s8, %s764_s20  ;;  %p771_p0 = scmp.lt.s32.totalorder (!%p142_p9), %s993_s8, %s769_s25 }
  0x15   : > { %s1052_s24 = smov (!%p166_p10, %s165_s24), 23  ;;  %694 = vmatpush3.bf16.msra.mxu0 %v691_v7 }
  0x16   : > { %s562_s10 = sshll.u32 %s1052_s24, 3  ;;  %696 = vmatprep.subr.bf16.mxu0 %v695_v10  ;;  %p766_p12 = pnand %p765_p11, %p892_p5 }
  0x17   : > { %s926_s19 = scalar_lea.vmem %s1043_s2, %s562_s10  ;;  %s770_s24 = scalar_lea.vmem %s769_s25, 1536 }
  0x18   : > { %v175_v12 = vld [vmem:[%s926_s19] sm:$0xff]  ;;  %v176_v13 = vld [vmem:[%s926_s19 + $0x8] sm:$0xff]  ;;  %v566_v16 = vld [vmem:[%s926_s19 + $0x18] sm:$0xff]  ;;  %p767_p13 = pneg %p766_p12  ;;  %p772_p1 = scmp.lt.s32.totalorder %s770_s24, %s764_s20 }
  0x19   : > { %v682_v15 = vpack.c.bf16 %v176_v13, %v175_v12  ;;  %v567_v17 = vld [vmem:[%s926_s19 + $0x20] sm:$0xff]  ;;  %v177_v19 = vld [vmem:[%s926_s19 + $0x10] sm:$0xff]  ;;  %698 = vmatpush3.bf16.msra.mxu0 %v695_v10  ;;  %v568_v28 = vld [vmem:[%s926_s19 + $0x28] sm:$0xff] }
  0x1a   : > { %v685_v23 = vpack.c.bf16 %v567_v17, %v566_v16  ;;  %700 = vmatprep.subr.bf16.mxu0 %v699_v18  ;;  %p773_p2 = por %p772_p1, %p771_p0 }
  0x1b   : > { %683 = vmatpush3.bf16.msra.mxu1 %v682_v15 }
  0x1c   : > { %614 = vmatprep.subr.mxu1 %v830_v1  ;;  %p774_p3 = pnand %p773_p2, %p767_p13 }
  0x1d   : > { %702 = vmatpush3.bf16.msra.mxu0 %v699_v18 }
  0x1e   : > { %704 = vmatprep.subr.bf16.mxu0 %v703_v24 }
  0x1f   : > { %615 = vmatpush3.msra.mxu1 %v177_v19 }
  0x20   : > { %617 = vmatmul.mubr.msk.f32.vlgmr.msra.gmra.mrb[0].mxu1 %vm178_vm1, %v172_v22  ;;  %684 = vmatprep.subr.bf16.mxu1 %v828_v0 }
  0x21   : > { %686 = vmatpush3.bf16.msra.mxu1 %v685_v23  ;;  %619 = vmatprep.mubr.msk.f32.mxu1 %vm829_vm0, %v830_v1 }
  0x22   : > { %629 = vmatprep.subr.mxu1 %v830_v1  ;;  %706 = vmatpush3.bf16.msra.mxu0 %v703_v24 }
  0x23   : > { %708 = vmatprep.subr.bf16.mxu0 %v707_v29 }
  0x24   : > { %620 = vmatmul.mubr.msk.f32.gmra.mrb[2].mxu1 %vm178_vm1, %v173_v27 }
  0x25   : > { %622 = vmatprep.mubr.msk.f32.mxu1 %vm829_vm0, %v830_v1  ;;  %630 = vmatpush3.msra.mxu1 %v568_v28 }
  0x26   : > { %710 = vmatpush3.bf16.msra.mxu0 %v707_v29 }
  0x27   : > { %712 = vmatprep.subr.bf16.mxu0 %v711_v33 }
  0x28   : > { %623 = vmatmul.mubr.msk.f32.gmra.mrb[4].mxu1 %vm178_vm1, %v174_v32 }
  0x29   : > { %631 = vmatprep.mubr.msk.f32.mxu1 %vm829_vm0, %v830_v1 }
  0x2a   : > { %714 = vmatpush3.bf16.msra.mxu0 %v711_v33 }
  0x2b   : > { %716 = vmatprep.subr.bf16.mxu0 %v715_v36 }
  0x2c   : > { %632 = vmatmul.mubr.msk.f32.vlgmr.msra.gmra.mrb[6].mxu1 %vm178_vm1, %v172_v22 }
  0x2d   : > { %634 = vmatprep.mubr.msk.f32.mxu1 %vm829_vm0, %v830_v1 }
  0x2e   : > { %718 = vmatpush3.bf16.msra.mxu0 %v715_v36 }
  0x30   : > { %635 = vmatmul.mubr.msk.f32.gmra.mrb[8].mxu1 %vm178_vm1, %v173_v27 }
  0x31   : > { %637 = vmatprep.mubr.msk.f32.mxu1 %vm829_vm0, %v830_v1 }
  0x34   : > { %638 = vmatmul.mubr.msk.f32.gmra.mrb[10].mxu1 %vm178_vm1, %v174_v32 }
  0xf3   : > { %v254_v37 = vpop.f32.mrb[0].mxu1 }
  0xf4   : > { %v618_v38 = vpop.f32.mrb[1].mxu1  ;;  %672 = vmatprep.mubr.f32.mxu0 %v254_v37 }
  0xf7   : > { %v259_v39 = vpop.f32.mrb[2].mxu1 }
  0xf8   : > { %v621_v40 = vpop.f32.mrb[3].mxu1  ;;  %673 = vmatmul.mubr.f32.vlgmr.msra.gmra.mrb[0].mxu0 %v259_v39 }
  0xfb   : > { %v264_v41 = vpop.f32.mrb[4].mxu1 }
  0xfc   : > { %v624_v42 = vpop.f32.mrb[5].mxu1  ;;  %675 = vmatprep.mubr.f32.mxu0 %v264_v41 }
  0xff   : > { %v341_v43 = vpop.f32.mrb[6].mxu1 }
 0x100   : > { %v633_v44 = vpop.f32.mrb[7].mxu1  ;;  %676 = vmatmul.mubr.f32.gmra.mrb[2].mxu0 %v341_v43 }
 0x103   : > { %v346_v45 = vpop.f32.mrb[8].mxu1 }
 0x104   : > { %v636_v46 = vpop.f32.mrb[9].mxu1  ;;  %678 = vmatprep.mubr.f32.mxu0 %v346_v45 }
 0x107   : > { %v351_v47 = vpop.f32.mrb[10].mxu1 }
 0x108   : > { %v639_v48 = vpop.f32.mrb[11].mxu1  ;;  %679 = vmatmul.mubr.f32.gmra.mrb[4].mxu0 %v351_v47 }
 0x1cb   : > { %v674_v49 = vpop.f32.mrb[0].mxu0 }
 0x1cc   : > { %477 = vst [vmem:[%s164_s6 + $0x8] sm:$0xff] %v674_v49  ;;  %v447_v50 = vpop.f32.mrb[1].mxu0 }
 0x1cd   : > { %476 = vst [vmem:[%s164_s6] sm:$0xff] %v447_v50 }
 0x1d3   : > { %v677_v51 = vpop.f32.mrb[2].mxu0 }
 0x1d4   : > { %479 = vst [vmem:[%s164_s6 + $0x18] sm:$0xff] %v677_v51  ;;  %v457_v52 = vpop.f32.mrb[3].mxu0 }
 0x1d5   : > { %478 = vst [vmem:[%s164_s6 + $0x10] sm:$0xff] %v457_v52 }
 0x1db   : > { %v680_v53 = vpop.f32.mrb[4].mxu0 }
 0x1dc   : > { %481 = vst [vmem:[%s164_s6 + $0x28] sm:$0xff] %v680_v53  ;;  %v467_v54 = vpop.f32.mrb[5].mxu0 }
 0x1dd   : > { %480 = vst [vmem:[%s164_s6 + $0x20] sm:$0xff] %v467_v54 }
 0x1de   : > { %777 = shalt.err (!%p774_p3)
}
 0x1df   : > { %s778_s26 = scalar_lea.hbm %s998_s11, 768  ;;  %s782_s28 = scalar_lea.hbm %s1044_s3, 3072 }
 0x1e0   : > { %p779_p4 = scmp.ne.s32.totalorder %s998_s11, %s778_s26  ;;  %p783_p9 = scmp.lt.u32.totalorder %s998_s11, %s1044_s3 }
 0x1e1   : > { %p784_p10 = scmp.lt.u32.totalorder %s782_s28, %s778_s26  ;;  %p786_p12 = scmp.lt.u32.totalorder %s778_s26, %s998_s11 }
 0x1e2   : > { %p780_p7 = pnand %p779_p4, %p892_p5 }
 0x1e3   : > { %p785_p11 = por %p784_p10, %p783_p9 }
 0x1e4   : > { %p781_p8 = pneg %p780_p7 }
 0x1e5   : > { %p787_p13 = por %p786_p12, %p785_p11 }
 0x1e7   : > { %p788_p0 = pnand %p787_p13, %p781_p8 }
 0x1e9   : > { %791 = shalt.err (!%p788_p0)
}
 0x1ea   : > { %s832_s4 = smov 128   ;;  %s833_s5 = smov 8  }
 0x1eb   : > { %720 = dma.vmem_to_hbm [thread:$0]  (%p892_p5), %s993_s8, 768, %s998_s11, %s1000_s17, %s832_s4, %s832_s4, %s833_s5  }
 0x1ec PF: > { %p726_p1 = scmp.ge.s32.totalorder %s826_s15, 2  ;;  %s511_s6 = sand.u32 1, %s814_s12  }
 0x1ed   : > { %s512_s7 = scalar_lea.sflag [#allocation4], %s511_s6 }
 0x1ee   : > { %p723_p2 = pnand %p726_p1, %p896_p6 }
 0x1f0   : > { %809 = dma.done.wait (!%p723_p2), %s512_s7, 768  }
 0x1f1   : > { %811 = vsyncadd (!%p723_p2), %s512_s7, 4294966528  ;;  %p13_p3 = scmp.ge.s32.totalorder %s879_s18, 6   ;;  %s1047_s12 = smov %s818_s13 }
 0x1f2   : > { %s1048_s13 = smov %s822_s14  ;;  %s1049_s14 = smov %s890_s21 }
 0x1f3   : > { %s1050_s15 = smov %s879_s18  ;;  %15 = sbr.rel (!%p13_p3) target bundleno = 3 (0x3), region = 69 }
 0x1fa   :  { %517 = vsyncpa [#allocation4], 1 }
 0x1fb   :  { %519 = vsyncpa [#allocation4 + $0x1], 1 }

</bundles_post_ra>
